<compile_context>
chip_gen: v5e
topology: v5e:2x2
jax: 0.10.0
libtpu: 0.0.40
codegen_flags: <defaults>
</compile_context>

<pallas_src>
import jax
import jax.numpy as jnp
from jax import lax
from jax.experimental import pallas as pl
from jax.experimental.pallas import tpu as pltpu


HIDDEN = 128        # per-head hidden width (PyTorch: Linear(s_dim, 128))
SUB_TILE = 256      # max rows per in-kernel sub-tile (bounds the vreg live range of h)


# ---------------------------------------------------------------------------
# Tiling helpers
# ---------------------------------------------------------------------------
def _round_up(v, m):
    return ((v + m - 1) // m) * m


def _batch_tile(batch, max_tile=1024, split_threshold=512):
    """Largest batch tile (multiple of 8) up to max_tile, but keep the grid >= 2 steps
    for big batches so v7x's 2 TensorCores both get work (harmless on v5e/v6e)."""
    tb = min(_round_up(batch, 8), max_tile)
    if batch >= split_threshold:
        tb = min(tb, _round_up(pl.cdiv(batch, 2), 8))
    return tb


def _sub_tile(tb):
    """Largest clean divisor of tb that is <= SUB_TILE; fall back to one pass."""
    if tb <= SUB_TILE:
        return tb
    for cand in (256, 128):
        if tb % cand == 0:
            return cand
    return tb


# ---------------------------------------------------------------------------
# Kernel: fused two-layer actor-critic MLP producing one lane-dense output slab.
# ---------------------------------------------------------------------------
def _make_kernel(sub_tb, n_sub):
    def kernel(x_ref, w1_ref, b1_ref, w2_ref, b2_ref, o_ref):
        w1 = w1_ref[...]          # [s_dim, 2*HIDDEN]  bf16 (VMEM-resident)
        b1 = b1_ref[...]          # [1, 2*HIDDEN]      f32
        w2 = w2_ref[...]          # [2*HIDDEN, out_w]  bf16
        b2 = b2_ref[...]          # [1, out_w]         f32

        def rows(row0):
            # bf16 feeds to the MXU; accumulate + epilogue in f32.
            x = x_ref[pl.ds(row0, sub_tb), :].astype(jnp.bfloat16)
            h = jnp.tanh(jnp.dot(x, w1, preferred_element_type=jnp.float32) + b1)
            o = jnp.dot(h.astype(jnp.bfloat16), w2,
                        preferred_element_type=jnp.float32) + b2
            o_ref[pl.ds(row0, sub_tb), :] = o

        if n_sub == 1:
            rows(0)
        else:
            def body(i, carry):
                rows(pl.multiple_of(i * sub_tb, sub_tb))
                return carry
            lax.fori_loop(0, n_sub, body, 0, unroll=True)

    return kernel


# ---------------------------------------------------------------------------
# Wrappers
# ---------------------------------------------------------------------------
def net_forward_slab(x, fused, *, max_tile=1024):
    """Run the fused actor-critic MLP.

    Returns the lane-dense [B, out_w] slab: columns [0:a_dim] are the policy logits,
    column a_dim is the value estimate, remaining columns are zero.  Prefer consuming
    this slab directly inside the caller's jit (softmax / losses) rather than
    materializing sliced copies through HBM.
    """
    B, s_dim = x.shape
    w1, b1, w2, b2 = fused["w1"], fused["b1"], fused["w2"], fused["b2"]
    out_w = w2.shape[1]
    hid2 = w1.shape[1]

    tb = _batch_tile(B, max_tile=max_tile)
    sub_tb = _sub_tile(tb)
    n_sub = tb // sub_tb
    grid = (pl.cdiv(B, tb),)

    cost = pl.CostEstimate(
        flops=2 * B * (s_dim * hid2 + hid2 * out_w),
        transcendentals=B * hid2,
        bytes_accessed=(x.size * x.dtype.itemsize
                        + w1.size * w1.dtype.itemsize + b1.size * b1.dtype.itemsize
                        + w2.size * w2.dtype.itemsize + b2.size * b2.dtype.itemsize
                        + B * out_w * 4),
    )

    return pl.pallas_call(
        _make_kernel(sub_tb, n_sub),
        out_shape=jax.ShapeDtypeStruct((B, out_w), jnp.float32),
        grid=grid,
        in_specs=[
            pl.BlockSpec((tb, s_dim), lambda i: (i, 0)),   # x: tiled over the batch
            pl.BlockSpec(w1.shape, lambda i: (0, 0)),      # weights stay VMEM-resident
            pl.BlockSpec(b1.shape, lambda i: (0, 0)),
            pl.BlockSpec(w2.shape, lambda i: (0, 0)),
            pl.BlockSpec(b2.shape, lambda i: (0, 0)),
        ],
        out_specs=pl.BlockSpec((tb, out_w), lambda i: (i, 0)),
        compiler_params=pltpu.CompilerParams(
            dimension_semantics=("parallel",),
        ),
        cost_estimate=cost,
    )(x, w1, b1, w2, b2)


def net_forward(x, fused, *, max_tile=1024):
    """(logits, values) convenience wrapper — slices the slab lazily.  For hot paths,
    call net_forward_slab and consume the slab inside the same jit."""
    out = net_forward_slab(x, fused, max_tile=max_tile)
    a_dim = fused["a_dim"]
    return out[:, :a_dim], out[:, a_dim:a_dim + 1]


# ---------------------------------------------------------------------------
# Parameter construction / fusion
# ---------------------------------------------------------------------------
def init_params(key, s_dim, a_dim, hidden=HIDDEN):
    """Deterministic synthetic init mirroring set_init (normal(0, 0.1), zero bias)."""
    ks = jax.random.split(key, 4)
    std = 0.1
    return {
        # Stored as [in, out] so the kernel computes y = x @ W + b directly.
        "w_pi1": std * jax.random.normal(ks[0], (s_dim, hidden), jnp.float32),
        "b_pi1": jnp.zeros((1, hidden), jnp.float32),
        "w_pi2": std * jax.random.normal(ks[1], (hidden, a_dim), jnp.float32),
        "b_pi2": jnp.zeros((1, a_dim), jnp.float32),
        "w_v1": std * jax.random.normal(ks[2], (s_dim, hidden), jnp.float32),
        "b_v1": jnp.zeros((1, hidden), jnp.float32),
        "w_v2": std * jax.random.normal(ks[3], (hidden, 1), jnp.float32),
        "b_v2": jnp.zeros((1, 1), jnp.float32),
    }


def fuse_params(p):
    """Fuse per-head params into one wide bf16 layer-1 and a block-structured bf16
    layer-2 with a lane-dense (>=128-wide) output.  Value column is at index a_dim —
    keep fuse_params and the slab consumers in sync on that index."""
    s_dim, hidden = p["w_pi1"].shape
    a_dim = p["w_pi2"].shape[1]
    out_w = max(128, ((a_dim + 1 + 127) // 128) * 128)

    w1 = jnp.concatenate([p["w_pi1"], p["w_v1"]], axis=1)            # [s_dim, 2*hidden]
    b1 = jnp.concatenate([p["b_pi1"], p["b_v1"]], axis=1)            # [1, 2*hidden]

    w2 = jnp.zeros((2 * hidden, out_w), jnp.float32)
    w2 = w2.at[:hidden, :a_dim].set(p["w_pi2"])                      # policy block
    w2 = w2.at[hidden:, a_dim:a_dim + 1].set(p["w_v2"])              # value block
    b2 = jnp.zeros((1, out_w), jnp.float32)
    b2 = b2.at[:, :a_dim].set(p["b_pi2"])
    b2 = b2.at[:, a_dim:a_dim + 1].set(p["b_v2"])

    return {
        "w1": w1.astype(jnp.bfloat16),   # bf16 MXU operands
        "b1": b1,                        # f32 epilogue
        "w2": w2.astype(jnp.bfloat16),
        "b2": b2,
        "a_dim": a_dim,
    }


def reference_forward(x, p):
    h_pi = jnp.tanh(x @ p["w_pi1"] + p["b_pi1"])
    logits = h_pi @ p["w_pi2"] + p["b_pi2"]
    h_v = jnp.tanh(x @ p["w_v1"] + p["b_v1"])
    values = h_v @ p["w_v2"] + p["b_v2"]
    return logits, values


if __name__ == "__main__":
    max_charging_rate = 5
    s_dim = 32                      # state dim
    a_dim = 2 * max_charging_rate   # 10 actions

    key = jax.random.PRNGKey(0)
    k_x, k_p, k_xb = jax.random.split(key, 3)
    params = init_params(k_p, s_dim, a_dim)
    fused = fuse_params(params)

    # bf16 MXU inputs -> loosened tolerance vs the f32 reference.
    ATOL = RTOL = 3e-2

    # --- small batch: single grid step, no sub-tiling ---
    B = 8
    x = jax.random.normal(k_x, (B, s_dim), jnp.float32)
    logits, values = net_forward(x, fused)
    jax.block_until_ready((logits, values))
    ref_logits, ref_values = reference_forward(x, params)
    assert logits.shape == (B, a_dim) and values.shape == (B, 1)
    assert jnp.allclose(logits, ref_logits, atol=ATOL, rtol=RTOL)
    assert jnp.allclose(values, ref_values, atol=ATOL, rtol=RTOL)

    # --- larger batch: 2 grid steps (v7x megacore) + 256-row in-kernel sub-tiles,
    #     slab consumed inside a single jit (choose_action-style softmaxes) ---
    Bb = 1024
    xb = jax.random.normal(k_xb, (Bb, s_dim), jnp.float32)

    @jax.jit
    def fwd_and_probs(xin):
        slab = net_forward_slab(xin, fused)
        logits_ = slab[:, :a_dim]
        values_ = slab[:, a_dim:a_dim + 1]
        # Consume the slab in the same jit — no standalone slice kernels through HBM.
        p1 = jax.nn.softmax(slab[:, :max_charging_rate], axis=-1)
        p2 = jax.nn.softmax(slab[:, max_charging_rate:a_dim], axis=-1)
        return logits_, values_, p1, p2

    logits_b, values_b, p1, p2 = fwd_and_probs(xb)
    jax.block_until_ready((logits_b, values_b, p1, p2))
    ref_logits_b, ref_values_b = reference_forward(xb, params)
    assert jnp.allclose(logits_b, ref_logits_b, atol=ATOL, rtol=RTOL)
    assert jnp.allclose(values_b, ref_values_b, atol=ATOL, rtol=RTOL)
    assert jnp.allclose(p1.sum(-1), jnp.ones((Bb,), jnp.float32), atol=1e-3)
    assert jnp.allclose(p2.sum(-1), jnp.ones((Bb,), jnp.float32), atol=1e-3)

    # TODO(synk): choose_action's Categorical sampling and loss_func's training loss are
    # host-side / autodiff utilities outside the forward hot path; not kernelized.
    print("KERNEL_OK")
</pallas_src>

<mosaic_0001>
module attributes {stable_mosaic.version = 11 : i64} {
  func.func @kernel(%arg0: i32, %arg1: memref<8x32xf32, #tpu.memory_space<vmem>>, %arg2: memref<32x256xbf16, #tpu.memory_space<vmem>>, %arg3: memref<1x256xf32, #tpu.memory_space<vmem>>, %arg4: memref<256x128xbf16, #tpu.memory_space<vmem>>, %arg5: memref<1x128xf32, #tpu.memory_space<vmem>>, %arg6: memref<8x128xf32, #tpu.memory_space<vmem>>) attributes {dimension_semantics = [#tpu.dimension_semantics<parallel>], iteration_bounds = array<i64: 1>, scalar_prefetch = 0 : i64, scratch_operands = 0 : i64, tpu.core_type = #tpu.core_type<tc>, window_params = [{transform_indices = @transform_0, window_bounds = array<i64: 8, 32>}, {pipeline_mode = #tpu.pipeline_mode<synchronous>, transform_indices = @transform_1, window_bounds = array<i64: 32, 256>}, {pipeline_mode = #tpu.pipeline_mode<synchronous>, transform_indices = @transform_2, window_bounds = array<i64: 1, 256>}, {pipeline_mode = #tpu.pipeline_mode<synchronous>, transform_indices = @transform_3, window_bounds = array<i64: 256, 128>}, {pipeline_mode = #tpu.pipeline_mode<synchronous>, transform_indices = @transform_4, window_bounds = array<i64: 1, 128>}, {transform_indices = @transform_5, window_bounds = array<i64: 8, 128>}]} {
    %c0 = arith.constant 0 : index
    %c0_0 = arith.constant 0 : index
    %0 = vector.load %arg2[%c0, %c0_0] : memref<32x256xbf16, #tpu.memory_space<vmem>>, vector<32x256xbf16>
    %c0_1 = arith.constant 0 : index
    %c0_2 = arith.constant 0 : index
    %1 = vector.load %arg3[%c0_1, %c0_2] : memref<1x256xf32, #tpu.memory_space<vmem>>, vector<1x256xf32>
    %c0_3 = arith.constant 0 : index
    %c0_4 = arith.constant 0 : index
    %2 = vector.load %arg4[%c0_3, %c0_4] : memref<256x128xbf16, #tpu.memory_space<vmem>>, vector<256x128xbf16>
    %c0_5 = arith.constant 0 : index
    %c0_6 = arith.constant 0 : index
    %3 = vector.load %arg5[%c0_5, %c0_6] : memref<1x128xf32, #tpu.memory_space<vmem>>, vector<1x128xf32>
    %c0_7 = arith.constant 0 : index
    %c0_8 = arith.constant 0 : index
    %4 = vector.load %arg1[%c0_7, %c0_8] : memref<8x32xf32, #tpu.memory_space<vmem>>, vector<8x32xf32>
    %5 = arith.truncf %4 : vector<8x32xf32> to vector<8x32xbf16>
    %cst = arith.constant dense<0.000000e+00> : vector<8x256xf32>
    %6 = tpu.matmul %5, %0, %cst {dimension_numbers = #tpu.dot_dimension_numbers<[1], [0], [0], [1], [0, 0, 1, 1], [], []>} : vector<8x32xbf16>, vector<32x256xbf16>, vector<8x256xf32> -> vector<8x256xf32>
    %7 = vector.broadcast %1 : vector<1x256xf32> to vector<8x256xf32>
    %8 = arith.addf %6, %7 : vector<8x256xf32>
    %9 = math.tanh %8 : vector<8x256xf32>
    %10 = arith.truncf %9 : vector<8x256xf32> to vector<8x256xbf16>
    %cst_9 = arith.constant dense<0.000000e+00> : vector<8x128xf32>
    %11 = tpu.matmul %10, %2, %cst_9 {dimension_numbers = #tpu.dot_dimension_numbers<[1], [0], [0], [1], [0, 0, 1, 1], [], []>} : vector<8x256xbf16>, vector<256x128xbf16>, vector<8x128xf32> -> vector<8x128xf32>
    %12 = vector.broadcast %3 : vector<1x128xf32> to vector<8x128xf32>
    %13 = arith.addf %11, %12 : vector<8x128xf32>
    %c0_10 = arith.constant 0 : index
    %c0_11 = arith.constant 0 : index
    %14 = vector.load %arg6[%c0_10, %c0_11] : memref<8x128xf32, #tpu.memory_space<vmem>>, vector<8x128xf32>
    tpu.vector_store %arg6[%c0_10, %c0_11], %13 {strides = array<i32>} : memref<8x128xf32, #tpu.memory_space<vmem>>, vector<8x128xf32>,
    return
  }
  func.func @transform_0(%arg0: i32) -> (i32, i32) {
    %c0_i32 = arith.constant 0 : i32
    %c0_i32_0 = arith.constant 0 : i32
    return %arg0, %c0_i32 : i32, i32
  }
  func.func @transform_1(%arg0: i32) -> (i32, i32) {
    %c0_i32 = arith.constant 0 : i32
    %c0_i32_0 = arith.constant 0 : i32
    %c0_i32_1 = arith.constant 0 : i32
    return %c0_i32, %c0_i32_0 : i32, i32
  }
  func.func @transform_2(%arg0: i32) -> (i32, i32) {
    %c0_i32 = arith.constant 0 : i32
    %c0_i32_0 = arith.constant 0 : i32
    %c0_i32_1 = arith.constant 0 : i32
    return %c0_i32, %c0_i32_0 : i32, i32
  }
  func.func @transform_3(%arg0: i32) -> (i32, i32) {
    %c0_i32 = arith.constant 0 : i32
    %c0_i32_0 = arith.constant 0 : i32
    %c0_i32_1 = arith.constant 0 : i32
    return %c0_i32, %c0_i32_0 : i32, i32
  }
  func.func @transform_4(%arg0: i32) -> (i32, i32) {
    %c0_i32 = arith.constant 0 : i32
    %c0_i32_0 = arith.constant 0 : i32
    %c0_i32_1 = arith.constant 0 : i32
    return %c0_i32, %c0_i32_0 : i32, i32
  }
  func.func @transform_5(%arg0: i32) -> (i32, i32) {
    %c0_i32 = arith.constant 0 : i32
    %c0_i32_0 = arith.constant 0 : i32
    return %arg0, %c0_i32 : i32, i32
  }
}

</mosaic_0001>

<bundles_post_ra>
// kernel: tpu_custom_call.1
= control target key start
LH: loop header
LB: loop body
LE: loop exit
PB: predicated region body
PF: predicated region fallthrough
CT: control target
= control target key end

     0   :  { %10 = vsyncpa [#allocation3], 0  ;;  %s626_s0 = inlined_call_operand.hbm [shape: f32[8,32], index: 0, kind: input, shape index: {}]   ;;  %s627_s1 = inlined_call_operand.hbm [shape: bf16[32,256], index: 1, kind: input, shape index: {}]   ;;  %s628_s2 = inlined_call_operand.hbm [shape: f32[1,256], index: 2, kind: input, shape index: {}]   ;;  %s629_s3 = inlined_call_operand.hbm [shape: bf16[256,128], index: 3, kind: input, shape index: {}]   ;;  %s630_s4 = inlined_call_operand.vmem [shape: f32[1,128], index: 4, kind: input, shape index: {}]   ;;  %s631_s5 = inlined_call_operand.hbm [shape: f32[8,128], index: 5, kind: output, shape index: {}]  }
   0x1   :  { %11 = vsyncpa [#allocation6], 0 }
   0x2   :  { %12 = vsyncpa [#allocation9], 0  ;;  %s29_s20 = sshll.u32 %s627_s1, 4  ;;  %s30_s20 = int_to_ptr.hbm [resolvable:$true] %s29_s20 }
   0x3   :  { %13 = vsyncpa [#allocation4], 0  ;;  %s569_s21 = smov [#allocation5]   ;;  %s19_s25 = sshll.u32 %s626_s0, 4  ;;  %s20_s25 = int_to_ptr.hbm [resolvable:$true] %s19_s25 }
   0x4   :  { %s31_s22 = sshll.u32 %s569_s21, 4  ;;  %s570_s26 = smov 128   ;;  %s32_s22 = int_to_ptr.vmem [resolvable:$true] %s31_s22 }
   0x5   :  { %s571_s27 = smov 8   ;;  %s572_s28 = smov [#allocation2]  }
   0x6   :  { %37 = dma.hbm_to_vmem [thread:$0]  %s30_s20, 512, %s32_s22, [#allocation6], %s570_s26, %s570_s26, %s571_s27  }
   0x7   :  { %s21_s29 = sshll.u32 %s572_s28, 4  ;;  %s43_s7 = sshll.u32 %s628_s2, 4  ;;  %s22_s29 = int_to_ptr.vmem [resolvable:$true] %s21_s29  ;;  %s44_s7 = int_to_ptr.hbm [resolvable:$true] %s43_s7 }
   0x8   :  { %24 = dma.hbm_to_vmem [thread:$0]  %s20_s25, 128, %s22_s29, [#allocation3]  }
   0x9   :  { %s53_s9 = sshll.u32 %s629_s3, 4  ;;  %s573_s10 = smov [#allocation7]   ;;  %s54_s9 = int_to_ptr.hbm [resolvable:$true] %s53_s9 }
   0xa   :  { %s45_s11 = sshll.u32 %s573_s10, 4  ;;  %s574_s0 = smov [#allocation8]   ;;  %s46_s11 = int_to_ptr.vmem [resolvable:$true] %s45_s11 }
   0xb   :  { %48 = dma.hbm_to_vmem [thread:$0]  %s44_s7, 32, %s46_s11, [#allocation6]  }
   0xc   :  { %s55_s12 = sshll.u32 %s574_s0, 4  ;;  %s575_s13 = smov 64   ;;  %s56_s12 = int_to_ptr.vmem [resolvable:$true] %s55_s12 }
   0xd   :  { %s576_s14 = smov 4  }
   0xe   :  { %61 = dma.hbm_to_vmem [thread:$0]  %s54_s9, 2048, %s56_s12, [#allocation9], %s575_s13, %s575_s13, %s576_s14  }
   0xf   :  { %561 = dma.done.wait [#allocation3], 128  }
  0x10   :  { %562 = vsyncadd [#allocation3], 4294967168 }
  0x11   :  { %563 = dma.done.wait [#allocation6], 544  }
  0x12   :  { %564 = vsyncadd [#allocation6], 4294966752 }
  0x13   :  { %565 = dma.done.wait [#allocation9], 2048  }
  0x14   :  { %566 = vsyncadd [#allocation9], 4294965248  ;;  %v335_v0 = vld [vmem:[#allocation5 + $0x10] sm:$0xf]  ;;  %v410_v1 = vld [vmem:[#allocation5 + $0x14] sm:$0xf0] }
  0x15   :  { %v409_v2 = vld [vmem:[#allocation5 + $0x14] sm:$0xf]  ;;  %v336_v3 = vor.u32 %v410_v1, %v335_v0  ;;  %v337_v4 = vld [vmem:[#allocation5 + $0x18] sm:$0xf0]  ;;  %v327_v5 = vld [vmem:[#allocation5] sm:$0xf] }
  0x16   :  { %v408_v6 = vld [vmem:[#allocation5 + $0x4] sm:$0xf0]  ;;  %v340_v7 = vor.u32 %v409_v2, %v337_v4  ;;  %v407_v8 = vld [vmem:[#allocation5 + $0x4] sm:$0xf]  ;;  %v329_v9 = vld [vmem:[#allocation5 + $0x8] sm:$0xf0] }
  0x17   :  { %156 = vmatpush.bf16.msra.mxu0 %v336_v3  ;;  %v328_v10 = vor.u32 %v408_v6, %v327_v5  ;;  %v119_v11 = vld [vmem:[#allocation2] sm:$0xff]  ;;  %v332_v14 = vor.u32 %v407_v8, %v329_v9  ;;  %vm146_vm0 = vcmask 261120   ;;  %v416_v18 = vld [vmem:[#allocation8 + $0x28] sm:$0xff]  ;;  %v415_v20 = vld [vmem:[#allocation8 + $0x20] sm:$0xff]  ;;  %s577_s15 = smov [#allocation10]   ;;  %s313_s19 = sshll.u32 %s631_s5, 4  ;;  %s314_s19 = int_to_ptr.hbm [resolvable:$true] %s313_s19 }
  0x18   :  { %v418_v12 = vld [vmem:[#allocation8 + $0x38] sm:$0xff]  ;;  %169 = vmatpush.bf16.msra.mxu1 %v340_v7  ;;  %v417_v15 = vld [vmem:[#allocation8 + $0x30] sm:$0xff]  ;;  %v120_v17 = vpack.c.bf16 %v119_v11, %v119_v11  ;;  %v424_v19 = vld [vmem:[#allocation8 + $0x68] sm:$0xff]  ;;  %s311_s16 = sshll.u32 %s577_s15, 4  ;;  %s312_s16 = int_to_ptr.vmem [resolvable:$true] %s311_s16 }
  0x19   :  { %v426_v13 = vld [vmem:[#allocation8 + $0x78] sm:$0xff]  ;;  %279 = vmatpush.bf16.msra.mxu2 %v418_v12  ;;  %v425_v16 = vld [vmem:[#allocation8 + $0x70] sm:$0xff]  ;;  %v423_v21 = vld [vmem:[#allocation8 + $0x60] sm:$0xff] }
  0x1a   :  { %292 = vmatpush.bf16.msra.mxu3 %v426_v13  ;;  %v414_v22 = vld [vmem:[#allocation8 + $0x18] sm:$0xff]  ;;  %v413_v24 = vld [vmem:[#allocation8 + $0x10] sm:$0xff]  ;;  %v412_v26 = vld [vmem:[#allocation8 + $0x8] sm:$0xff] }
  0x1b   :  { %157 = vmatpush.bf16.msra.mxu0 %v328_v10  ;;  %v422_v23 = vld [vmem:[#allocation8 + $0x58] sm:$0xff]  ;;  %v421_v25 = vld [vmem:[#allocation8 + $0x50] sm:$0xff]  ;;  %v420_v27 = vld [vmem:[#allocation8 + $0x48] sm:$0xff] }
  0x1c   :  { %170 = vmatpush.bf16.msra.mxu1 %v332_v14  ;;  %v411_v28 = vld [vmem:[#allocation8] sm:$0xff]  ;;  %v85_v30 = vld [vmem:[#allocation7] sm:$0x3]  ;;  %v436_v43 = vld [vmem:[%s630_s4] ss:$0 sm:$0xff] }
  0x1d   :  { %280 = vmatpush.bf16.msra.mxu2 %v417_v15  ;;  %v419_v29 = vld [vmem:[#allocation8 + $0x40] sm:$0xff]  ;;  %v122_v31 = vperm.slane %v85_v30, 0  ;;  %v123_v32 = vperm.slane %v85_v30, 1 }
  0x1e   :  { %293 = vmatpush.bf16.msra.mxu3 %v425_v16  ;;  %341 = vmatmul.msk.bf16.vlgmr.msra.gmra.mxu0 %vm146_vm0, %v120_v17 }
  0x1f   :  { %342 = vmatmul.msk.bf16.vlgmr.msra.gmra.mxu1 %vm146_vm0, %v120_v17 }
  0x21   :  { %281 = vmatpush.bf16.msra.mxu2 %v416_v18 }
  0x22   :  { %294 = vmatpush.bf16.msra.mxu3 %v424_v19 }
  0x25   :  { %282 = vmatpush.bf16.msra.mxu2 %v415_v20 }
  0x26   :  { %295 = vmatpush.bf16.msra.mxu3 %v423_v21 }
  0x29   :  { %283 = vmatpush.bf16.msra.mxu2 %v414_v22 }
  0x2a   :  { %296 = vmatpush.bf16.msra.mxu3 %v422_v23 }
  0x2d   :  { %284 = vmatpush.bf16.msra.mxu2 %v413_v24 }
  0x2e   :  { %297 = vmatpush.bf16.msra.mxu3 %v421_v25 }
  0x31   :  { %285 = vmatpush.bf16.msra.mxu2 %v412_v26 }
  0x32   :  { %298 = vmatpush.bf16.msra.mxu3 %v420_v27 }
  0x35   :  { %286 = vmatpush.bf16.msra.mxu2 %v411_v28 }
  0x36   :  { %299 = vmatpush.bf16.msra.mxu3 %v419_v29 }
  0x9b   :  { %v159_v33 = vpop.f32.mrf.mxu0 }
  0x9c   :  { %v160_v34 = vadd.f32 %v159_v33, %v122_v31  ;;  %v172_v35 = vpop.f32.mrf.mxu1 }
  0x9d   :  { %v173_v36 = vadd.f32 %v172_v35, %v123_v32 }
  0x9e   :  { %437 = vtanh.f32 %v160_v34 }
  0x9f   :  { %439 = vtanh.f32 %v173_v36 }
  0xa3   :  { %v161_v37 = vpop.f32.mrf.mxu0 }
  0xa4   :  { %v438_v38 = vpop.eup %437  ;;  %v174_v39 = vpop.f32.mrf.mxu1 }
  0xa5   :  { %v440_v40 = vpop.eup %439  ;;  %v178_v41 = vpack.c.bf16 %v438_v38, %v438_v38 }
  0xa6   :  { %v179_v42 = vpack.c.bf16 %v440_v40, %v440_v40 }
  0xa7   :  { %287 = vmatmul.bf16.vlgmr.msra.gmra.mxu2 %v178_v41 }
  0xa8   :  { %300 = vmatmul.bf16.vlgmr.msra.gmra.mxu3 %v179_v42 }
 0x12a   :  { %v288_v44 = vpop.f32.mrf.mxu2 }
 0x12b   :  { %v289_v45 = vadd.f32 %v436_v43, %v288_v44  ;;  %v301_v46 = vpop.f32.mrf.mxu3 }
 0x12d   :  { %v302_v47 = vadd.f32 %v301_v46, %v289_v45 }
 0x12f   :  { %305 = vst [vmem:[#allocation10] sm:$0xff] %v302_v47 }
 0x130   :  { %316 = dma.vmem_to_hbm [thread:$0]  %s312_s16, 128, %s314_s19, [#allocation4]  }
 0x132   :  { %v290_v48 = vpop.f32.mrf.mxu2 }
 0x133   :  { %v303_v49 = vpop.f32.mrf.mxu3 }
 0x134   :  { %567 = dma.done.wait [#allocation4], 128  }
 0x135   :  { %568 = vsyncadd [#allocation4], 4294967168 }
 0x136   :  { %321 = vsyncpa [#allocation3], 1 }
 0x137   :  { %322 = vsyncpa [#allocation6], 1 }
 0x138   :  { %323 = vsyncpa [#allocation9], 1 }
 0x139   :  { %324 = vsyncpa [#allocation4], 1 }

</bundles_post_ra>
